<compile_context>
chip_gen: v7x
topology: tpu7x:2x2x1
jax: 0.10.0
libtpu: 0.0.40
codegen_flags: <defaults>
</compile_context>

<pallas_src>
import functools
import math

import jax
import jax.numpy as jnp
from jax.experimental import pallas as pl
from jax.experimental.pallas import tpu as pltpu


# ---------------------------------------------------------------------------
# Kernel
# ---------------------------------------------------------------------------
def token_linear_kernel(mu_ref, sig_ref, eps_ref, out_ref, elbo_ref, *,
                        log_std_prior, inv_var_prior):
    i = pl.program_id(0)

    mu = mu_ref[...].astype(jnp.float32)
    raw = sig_ref[...].astype(jnp.float32)
    eps = eps_ref[...].astype(jnp.float32)

    # Numerically stable softplus: max(x, 0) + log1p(exp(-|x|)).
    sigma = jnp.maximum(raw, 0.0) + jnp.log1p(jnp.exp(-jnp.abs(raw)))

    # Reparameterized sample from the posterior N(mu, sigma).
    out_ref[...] = (mu + sigma * eps).astype(out_ref.dtype)

    # KL( N(mu, sigma) || N(0, std_prior) ); guard log underflow.
    safe_sigma = jnp.maximum(sigma, jnp.float32(1e-30))
    kl = (jnp.float32(log_std_prior) - jnp.log(safe_sigma)
          + 0.5 * (sigma * sigma + mu * mu) * jnp.float32(inv_var_prior)
          - 0.5)

    # Resident grid-carried accumulator (block index constant across the
    # "arbitrary" row-tile axis).  Zero it on the first step.
    @pl.when(i == 0)
    def _():
        elbo_ref[...] = jnp.zeros_like(elbo_ref)

    # Fold the (tile_r, W) KL tile into the (acc_rows, W) accumulator with
    # pure full-vreg VALU adds: no cross-sublane XLU reduce, no masked
    # single-sublane store.  The tiny final reduce happens in the wrapper.
    acc_rows = elbo_ref.shape[0]
    elbo_ref[...] += jnp.sum(kl.reshape(-1, acc_rows, kl.shape[-1]), axis=0)


# ---------------------------------------------------------------------------
# Layout / budget helpers
# ---------------------------------------------------------------------------
_NUM_STREAMS = 4  # mu, sig, eps, out -- each double-buffered by BlockSpec


def _vmem_budget_bytes():
    """Generation-aware VMEM budget (leave headroom for compiler scratch)."""
    try:
        cap = pltpu.get_tpu_info().vmem_capacity_bytes
    except Exception:
        cap = 64 << 20  # conservative fallback (e.g. CPU interpret mode)
    # 3/4 of physical capacity, capped at 96 MiB: ~96 MiB on v5e/v6e (128 MiB),
    # ~48 MiB on v7x (64 MiB per TensorCore).
    return min(cap * 3 // 4, 96 << 20)


def _sublane_multiple(elem_bytes):
    return {4: 8, 2: 16, 1: 32}.get(elem_bytes, 8)


def _choose_layout(n_elems, elem_bytes, max_lane_width, target_tile_bytes):
    """Pick (lane_width W, rows, tile_rows) for a flat n-element slab."""
    lanes = 128
    sub = _sublane_multiple(elem_bytes)

    # Lane width: largest multiple of 128 dividing n (capped), preferring a
    # width whose row count is itself a multiple of the sublane packing.
    w = None
    for require_sub in (True, False):
        for cand in range((max_lane_width // lanes) * lanes, lanes - 1, -lanes):
            if n_elems % cand:
                continue
            if require_sub and (n_elems // cand) % sub:
                continue
            w = cand
            break
        if w is not None:
            break
    rows = n_elems // w

    # Row-tile height: multiple of `sub` dividing rows, ~target_tile_bytes per
    # array; fall back to a single full-height block.
    target_rows = max(sub, (target_tile_bytes // (w * elem_bytes)) // sub * sub)
    tile_r = rows
    for cand in range(min(target_rows, rows) // sub * sub, sub - 1, -sub):
        if rows % cand == 0:
            tile_r = cand
            break
    return w, rows, tile_r


# ---------------------------------------------------------------------------
# Wrapper
# ---------------------------------------------------------------------------
def token_linear(inputs_mu, inputs_sig, seed, *, std_prior=1.0,
                 max_lane_width=2048, target_tile_bytes=None):
    """Returns (output, elbo) matching TokenLinear.forward."""
    assert inputs_mu.shape == inputs_sig.shape
    orig_shape = inputs_mu.shape
    io_dtype = inputs_mu.dtype
    n = int(inputs_mu.size)
    assert n % 128 == 0, "total element count must be a multiple of 128"

    vmem_budget = _vmem_budget_bytes()
    if target_tile_bytes is None:
        # 4 streams x 2 buffers, keep ~8 MiB headroom for scratch/accumulator.
        target_tile_bytes = max(1 << 20,
                                (vmem_budget - (8 << 20)) // (_NUM_STREAMS * 2))

    elem_bytes = jnp.dtype(io_dtype).itemsize
    w, rows, tile_r = _choose_layout(n, elem_bytes, max_lane_width,
                                     target_tile_bytes)
    num_steps = rows // tile_r
    acc_rows = 8 if tile_r % 8 == 0 else 1

    mu2 = inputs_mu.reshape(rows, w)
    sig2 = inputs_sig.reshape(rows, w)
    # Host-side standard-normal noise (same dtype as I/O -> same HBM traffic
    # per stream).  Tiling-invariant and portable across backends.
    eps2 = jax.random.normal(jax.random.PRNGKey(seed), (rows, w), dtype=io_dtype)

    kernel = functools.partial(
        token_linear_kernel,
        log_std_prior=math.log(float(std_prior)),
        inv_var_prior=1.0 / (float(std_prior) * float(std_prior)),
    )

    tile_map = lambda i: (i, 0)
    out2, elbo_parts = pl.pallas_call(
        kernel,
        out_shape=(
            jax.ShapeDtypeStruct((rows, w), io_dtype),
            jax.ShapeDtypeStruct((acc_rows, w), jnp.float32),
        ),
        grid=(num_steps,),
        in_specs=[
            pl.BlockSpec((tile_r, w), tile_map),
            pl.BlockSpec((tile_r, w), tile_map),
            pl.BlockSpec((tile_r, w), tile_map),
        ],
        out_specs=(
            pl.BlockSpec((tile_r, w), tile_map),
            pl.BlockSpec((acc_rows, w), lambda i: (0, 0)),
        ),
        compiler_params=pltpu.CompilerParams(
            dimension_semantics=("arbitrary",),
            vmem_limit_bytes=int(vmem_budget),
        ),
    )(mu2, sig2, eps2)

    output = out2.reshape(orig_shape)
    elbo = jnp.sum(elbo_parts)      # tiny final reduce over the lane partials
    return output, elbo


# ---------------------------------------------------------------------------
# Demo / self-test
# ---------------------------------------------------------------------------
if __name__ == "__main__":
    key = jax.random.PRNGKey(0)
    k_mu1, k_sig1, k_mu2, k_sig2, k_mu3, k_sig3 = jax.random.split(key, 6)

    def reference(mu, sig, eps):
        mu32 = mu.astype(jnp.float32)
        sigma = jax.nn.softplus(sig.astype(jnp.float32))
        out = (mu32 + sigma * eps.astype(jnp.float32)).astype(mu.dtype)
        kl = 0.5 * (sigma ** 2 + mu32 ** 2) - jnp.log(sigma) - 0.5
        return out, jnp.sum(kl), sigma

    # --- Case 1: small NCHW f32 input (single-tile path) ---------------------
    shape1 = (2, 4, 16, 16)
    mu1 = jax.random.normal(k_mu1, shape1, dtype=jnp.float32)
    sig1 = jax.random.normal(k_sig1, shape1, dtype=jnp.float32)
    out1, elbo1 = token_linear(mu1, sig1, seed=1234)
    jax.block_until_ready((out1, elbo1))

    eps1 = jax.random.normal(jax.random.PRNGKey(1234), shape1, dtype=jnp.float32)
    out1_ref, elbo1_ref, _ = reference(mu1, sig1, eps1)
    assert out1.shape == shape1
    assert bool(jnp.isfinite(out1).all())
    assert jnp.allclose(out1, out1_ref, rtol=1e-5, atol=1e-5)
    assert jnp.allclose(elbo1, elbo1_ref, rtol=5e-4, atol=1e-2), (elbo1, elbo1_ref)
    imp1 = (out1 - mu1) / jax.nn.softplus(sig1)      # implied standard-normal noise
    assert abs(float(imp1.mean())) < 0.15
    assert 0.8 < float(imp1.std()) < 1.2

    # --- Case 2: larger f32 input, small tiles -> multi-step accumulator -----
    shape2 = (2, 8, 64, 64)
    mu2 = jax.random.normal(k_mu2, shape2, dtype=jnp.float32)
    sig2 = jax.random.normal(k_sig2, shape2, dtype=jnp.float32)
    out2, elbo2 = token_linear(mu2, sig2, seed=7, target_tile_bytes=64 * 1024)
    jax.block_until_ready((out2, elbo2))

    eps2 = jax.random.normal(jax.random.PRNGKey(7), shape2, dtype=jnp.float32)
    out2_ref, elbo2_ref, _ = reference(mu2, sig2, eps2)
    assert jnp.allclose(out2, out2_ref, rtol=1e-5, atol=1e-5)
    assert jnp.allclose(elbo2, elbo2_ref, rtol=1e-3, atol=1.0), (elbo2, elbo2_ref)
    # Deterministic for a fixed seed; different for a different seed.
    out2b, _ = token_linear(mu2, sig2, seed=7, target_tile_bytes=64 * 1024)
    assert jnp.array_equal(out2, out2b)
    out2c, _ = token_linear(mu2, sig2, seed=8, target_tile_bytes=64 * 1024)
    assert not jnp.array_equal(out2, out2c)
    # Tiling-invariant sampling: default (large) tiles give identical output.
    out2d, elbo2d = token_linear(mu2, sig2, seed=7)
    assert jnp.array_equal(out2, out2d)
    assert jnp.allclose(elbo2, elbo2d, rtol=1e-4, atol=1.0)

    # --- Case 3: bf16 I/O path (halved HBM traffic, f32 internal math) -------
    shape3 = (2, 4, 16, 32)
    mu3 = jax.random.normal(k_mu3, shape3, dtype=jnp.float32).astype(jnp.bfloat16)
    sig3 = jax.random.normal(k_sig3, shape3, dtype=jnp.float32).astype(jnp.bfloat16)
    out3, elbo3 = token_linear(mu3, sig3, seed=42)
    jax.block_until_ready((out3, elbo3))

    eps3 = jax.random.normal(jax.random.PRNGKey(42), shape3, dtype=jnp.bfloat16)
    out3_ref, elbo3_ref, _ = reference(mu3, sig3, eps3)
    assert out3.dtype == jnp.bfloat16
    assert jnp.allclose(out3.astype(jnp.float32), out3_ref.astype(jnp.float32),
                        rtol=2e-2, atol=2e-2)
    assert jnp.allclose(elbo3, elbo3_ref, rtol=2e-2, atol=5.0), (elbo3, elbo3_ref)

    print("KERNEL_OK")
</pallas_src>

<mosaic_0001>
module attributes {stable_mosaic.version = 11 : i64} {
  func.func @token_linear_kernel(%arg0: i32, %arg1: memref<8x256xf32, #tpu.memory_space<vmem>>, %arg2: memref<8x256xf32, #tpu.memory_space<vmem>>, %arg3: memref<8x256xf32, #tpu.memory_space<vmem>>, %arg4: memref<8x256xf32, #tpu.memory_space<vmem>>, %arg5: memref<8x256xf32, #tpu.memory_space<vmem>>) attributes {dimension_semantics = [#tpu.dimension_semantics<arbitrary>], iteration_bounds = array<i64: 1>, scalar_prefetch = 0 : i64, scratch_operands = 0 : i64, tpu.core_type = #tpu.core_type<tc>, window_params = [{transform_indices = @transform_0, window_bounds = array<i64: 8, 256>}, {transform_indices = @transform_1, window_bounds = array<i64: 8, 256>}, {transform_indices = @transform_2, window_bounds = array<i64: 8, 256>}, {transform_indices = @transform_3, window_bounds = array<i64: 8, 256>}, {pipeline_mode = #tpu.pipeline_mode<synchronous>, transform_indices = @transform_4, window_bounds = array<i64: 8, 256>}]} {
    %c0 = arith.constant 0 : index
    %c0_0 = arith.constant 0 : index
    %0 = vector.load %arg1[%c0, %c0_0] : memref<8x256xf32, #tpu.memory_space<vmem>>, vector<8x256xf32>
    %c0_1 = arith.constant 0 : index
    %c0_2 = arith.constant 0 : index
    %1 = vector.load %arg2[%c0_1, %c0_2] : memref<8x256xf32, #tpu.memory_space<vmem>>, vector<8x256xf32>
    %c0_3 = arith.constant 0 : index
    %c0_4 = arith.constant 0 : index
    %2 = vector.load %arg3[%c0_3, %c0_4] : memref<8x256xf32, #tpu.memory_space<vmem>>, vector<8x256xf32>
    %cst = arith.constant 0.000000e+00 : f32
    %3 = vector.broadcast %cst : f32 to vector<8x256xf32>
    %4 = arith.maximumf %1, %3 : vector<8x256xf32>
    %5 = math.absf %1 : vector<8x256xf32>
    %cst_5 = arith.constant 0.000000e+00 : f32
    %6 = vector.broadcast %cst_5 : f32 to vector<8x256xf32>
    %7 = arith.subf %6, %5 : vector<8x256xf32>
    %8 = math.exp %7 : vector<8x256xf32>
    %9 = math.log1p %8 : vector<8x256xf32>
    %10 = arith.addf %4, %9 : vector<8x256xf32>
    %11 = arith.mulf %10, %2 : vector<8x256xf32>
    %12 = arith.addf %0, %11 : vector<8x256xf32>
    %c0_6 = arith.constant 0 : index
    %c0_7 = arith.constant 0 : index
    %13 = vector.load %arg4[%c0_6, %c0_7] : memref<8x256xf32, #tpu.memory_space<vmem>>, vector<8x256xf32>
    tpu.vector_store %arg4[%c0_6, %c0_7], %12 {strides = array<i32>} : memref<8x256xf32, #tpu.memory_space<vmem>>, vector<8x256xf32>,
    %cst_8 = arith.constant 1.000000e-30 : f32
    %14 = vector.broadcast %cst_8 : f32 to vector<8x256xf32>
    %15 = arith.maximumf %10, %14 : vector<8x256xf32>
    %16 = math.log %15 : vector<8x256xf32>
    %cst_9 = arith.constant 0.000000e+00 : f32
    %17 = vector.broadcast %cst_9 : f32 to vector<8x256xf32>
    %18 = arith.subf %17, %16 : vector<8x256xf32>
    %19 = arith.mulf %10, %10 : vector<8x256xf32>
    %20 = arith.mulf %0, %0 : vector<8x256xf32>
    %21 = arith.addf %19, %20 : vector<8x256xf32>
    %cst_10 = arith.constant 5.000000e-01 : f32
    %22 = vector.broadcast %cst_10 : f32 to vector<8x256xf32>
    %23 = arith.mulf %22, %21 : vector<8x256xf32>
    %cst_11 = arith.constant 1.000000e+00 : f32
    %24 = vector.broadcast %cst_11 : f32 to vector<8x256xf32>
    %25 = arith.mulf %23, %24 : vector<8x256xf32>
    %26 = arith.addf %18, %25 : vector<8x256xf32>
    %cst_12 = arith.constant 5.000000e-01 : f32
    %27 = vector.broadcast %cst_12 : f32 to vector<8x256xf32>
    %28 = arith.subf %26, %27 : vector<8x256xf32>
    %c0_i32 = arith.constant 0 : i32
    %29 = arith.cmpi eq, %arg0, %c0_i32 : i32
    %30 = arith.extui %29 : i1 to i32
    %c0_i32_13 = arith.constant 0 : i32
    %31 = arith.cmpi ne, %30, %c0_i32_13 : i32
    scf.if %31 {
      %cst_19 = arith.constant 0.000000e+00 : f32
      %37 = vector.broadcast %cst_19 : f32 to vector<8x256xf32>
      %c0_20 = arith.constant 0 : index
      %c0_21 = arith.constant 0 : index
      %38 = vector.load %arg5[%c0_20, %c0_21] : memref<8x256xf32, #tpu.memory_space<vmem>>, vector<8x256xf32>
      tpu.vector_store %arg5[%c0_20, %c0_21], %37 {strides = array<i32>} : memref<8x256xf32, #tpu.memory_space<vmem>>, vector<8x256xf32>,
    } else {
    }
    %c0_14 = arith.constant 0 : index
    %c0_15 = arith.constant 0 : index
    %32 = vector.load %arg5[%c0_14, %c0_15] : memref<8x256xf32, #tpu.memory_space<vmem>>, vector<8x256xf32>
    %33 = vector.shape_cast %28 : vector<8x256xf32> to vector<1x8x256xf32>
    %cst_16 = arith.constant dense<0.000000e+00> : vector<8x256xf32>
    %34 = vector.multi_reduction <add>, %33, %cst_16 [0] : vector<1x8x256xf32> to vector<8x256xf32>
    %35 = arith.addf %32, %34 : vector<8x256xf32>
    %c0_17 = arith.constant 0 : index
    %c0_18 = arith.constant 0 : index
    %36 = vector.load %arg5[%c0_17, %c0_18] : memref<8x256xf32, #tpu.memory_space<vmem>>, vector<8x256xf32>
    tpu.vector_store %arg5[%c0_17, %c0_18], %35 {strides = array<i32>} : memref<8x256xf32, #tpu.memory_space<vmem>>, vector<8x256xf32>,
    return
  }
  func.func @transform_0(%arg0: i32) -> (i32, i32) {
    %c0_i32 = arith.constant 0 : i32
    %c0_i32_0 = arith.constant 0 : i32
    return %arg0, %c0_i32 : i32, i32
  }
  func.func @transform_1(%arg0: i32) -> (i32, i32) {
    %c0_i32 = arith.constant 0 : i32
    %c0_i32_0 = arith.constant 0 : i32
    return %arg0, %c0_i32 : i32, i32
  }
  func.func @transform_2(%arg0: i32) -> (i32, i32) {
    %c0_i32 = arith.constant 0 : i32
    %c0_i32_0 = arith.constant 0 : i32
    return %arg0, %c0_i32 : i32, i32
  }
  func.func @transform_3(%arg0: i32) -> (i32, i32) {
    %c0_i32 = arith.constant 0 : i32
    %c0_i32_0 = arith.constant 0 : i32
    return %arg0, %c0_i32 : i32, i32
  }
  func.func @transform_4(%arg0: i32) -> (i32, i32) {
    %c0_i32 = arith.constant 0 : i32
    %c0_i32_0 = arith.constant 0 : i32
    %c0_i32_1 = arith.constant 0 : i32
    return %c0_i32, %c0_i32_0 : i32, i32
  }
}

</mosaic_0001>

<bundles_post_ra>
// kernel: tpu_custom_call.1
= control target key start
LH: loop header
LB: loop body
LE: loop exit
PB: predicated region body
PF: predicated region fallthrough
CT: control target
= control target key end

     0   :  { %10 = vsyncpa [#allocation3], 0  ;;  %s387_s0 = inlined_call_operand.hbm [shape: f32[8,256], index: 0, kind: input, shape index: {}]   ;;  %s388_s1 = inlined_call_operand.hbm [shape: f32[8,256], index: 1, kind: input, shape index: {}]   ;;  %s389_s2 = inlined_call_operand.hbm [shape: f32[8,256], index: 2, kind: input, shape index: {}]   ;;  %s390_s3 = inlined_call_operand.hbm [shape: f32[8,256], index: 3, kind: output, shape index: {0}]   ;;  %s391_s4 = inlined_call_operand.hbm [shape: f32[8,256], index: 4, kind: output, shape index: {1}]  }
   0x1   :  { %11 = vsyncpa [#allocation6], 0 }
   0x2   :  { %12 = vsyncpa [#allocation4], 0 }
   0x3   :  { %13 = vsyncpa [#allocation10], 0  ;;  %s297_s15 = smov [#allocation5]   ;;  %s298_s17 = smov [#allocation2]  }
   0x4   :  { %s30_s16 = sshll.u32 %s297_s15, 4  ;;  %s20_s18 = sshll.u32 %s298_s17, 4  ;;  %s31_s16 = int_to_ptr.vmem [resolvable:$true] %s30_s16  ;;  %s21_s18 = int_to_ptr.vmem [resolvable:$true] %s20_s18 }
   0x5   :  { %s179_s21 = scalar_lea.hbm %s388_s1, 256 }
   0x6   :  { %p180_p0 = scmp.ne.s32.totalorder %s388_s1, %s179_s21  ;;  %p183_p1 = scmp.lt.u32.totalorder %s179_s21, %s388_s1 }
   0x8   :  { %p185_p2 = pnand %p183_p1, %p180_p0 }
   0xa   :  { %188 = shalt.err (!%p185_p2)
}
   0xb   :  { %s189_s26 = scalar_lea.vmem %s31_s16, 256  ;;  %p194_p4 = scmp.lt.s32.totalorder %s31_s16, %s31_s16 }
   0xc   :  { %p190_p3 = scmp.ne.s32.totalorder %s31_s16, %s189_s26  ;;  %p195_p5 = scmp.lt.s32.totalorder %s189_s26, %s189_s26 }
   0xe   :  { %p196_p6 = por %p195_p5, %p194_p4 }
  0x10   :  { %p197_p7 = pnand %p196_p6, %p190_p3 }
  0x12   :  { %200 = shalt.err (!%p197_p7)
}
  0x13   :  { %33 = dma.hbm_to_vmem [thread:$0]  %s388_s1, 256, %s31_s16, [#allocation6]  }
  0x14   :  { %s201_s5 = scalar_lea.hbm %s387_s0, 256 }
  0x15   :  { %p202_p8 = scmp.ne.s32.totalorder %s387_s0, %s201_s5  ;;  %p205_p9 = scmp.lt.u32.totalorder %s201_s5, %s387_s0 }
  0x17   :  { %p207_p10 = pnand %p205_p9, %p202_p8 }
  0x19   :  { %210 = shalt.err (!%p207_p10)
}
  0x1a   :  { %s211_s10 = scalar_lea.vmem %s21_s18, 256  ;;  %p216_p12 = scmp.lt.s32.totalorder %s21_s18, %s21_s18 }
  0x1b   :  { %p212_p11 = scmp.ne.s32.totalorder %s21_s18, %s211_s10  ;;  %p217_p13 = scmp.lt.s32.totalorder %s211_s10, %s211_s10 }
  0x1d   :  { %p218_p0 = por %p217_p13, %p216_p12 }
  0x1f   :  { %p219_p1 = pnand %p218_p0, %p212_p11 }
  0x21   :  { %222 = shalt.err (!%p219_p1)
}
  0x22   :  { %23 = dma.hbm_to_vmem [thread:$0]  %s387_s0, 256, %s21_s18, [#allocation3]  }
  0x23   :  { %s299_s12 = smov [#allocation7]   ;;  %s223_s16 = scalar_lea.hbm %s389_s2, 256 }
  0x24   :  { %s40_s13 = sshll.u32 %s299_s12, 4  ;;  %p224_p2 = scmp.ne.s32.totalorder %s389_s2, %s223_s16  ;;  %s41_s13 = int_to_ptr.vmem [resolvable:$true] %s40_s13 }
  0x25   :  { %p227_p3 = scmp.lt.u32.totalorder %s223_s16, %s389_s2 }
  0x27   :  { %p229_p4 = pnand %p227_p3, %p224_p2 }
  0x29   :  { %232 = shalt.err (!%p229_p4)
}
  0x2a   :  { %s233_s22 = scalar_lea.vmem %s41_s13, 256  ;;  %p238_p6 = scmp.lt.s32.totalorder %s41_s13, %s41_s13 }
  0x2b   :  { %p234_p5 = scmp.ne.s32.totalorder %s41_s13, %s233_s22  ;;  %p239_p7 = scmp.lt.s32.totalorder %s233_s22, %s233_s22 }
  0x2d   :  { %p240_p8 = por %p239_p7, %p238_p6 }
  0x2f   :  { %p241_p9 = pnand %p240_p8, %p234_p5 }
  0x31   :  { %244 = shalt.err (!%p241_p9)
}
  0x32   :  { %43 = dma.hbm_to_vmem [thread:$0]  %s389_s2, 256, %s41_s13, [#allocation6]  }
  0x33   :  { %289 = dma.done.wait [#allocation3], 256  }
  0x34   :  { %290 = vsyncadd [#allocation3], 4294967040 }
  0x35   :  { %291 = dma.done.wait [#allocation6], 512  }
  0x36   :  { %292 = vsyncadd [#allocation6], 4294966784  ;;  %v55_v0 = vld [vmem:[#allocation5] sm:$0xff]  ;;  %v56_v2 = vld [vmem:[#allocation5 + $0x8] sm:$0xff]  ;;  %s300_s2 = smov [#allocation8]  }
  0x37   :  { %v61_v1 = vand.u32 2147483647, %v55_v0  ;;  %v62_v3 = vand.u32 2147483647, %v56_v2  ;;  %v59_v20 = vmax.f32 %v55_v0, 0.0  ;;  %v60_v24 = vmax.f32 %v56_v2, 0.0 }
  0x38   :  { %v57_v26 = vld [vmem:[#allocation7] sm:$0xff]  ;;  %v58_v29 = vld [vmem:[#allocation7 + $0x8] sm:$0xff]  ;;  %s135_s23 = sshll.u32 %s300_s2, 4  ;;  %s136_s23 = int_to_ptr.vmem [resolvable:$true] %s135_s23 }
  0x39   :  { %v63_v4 = vsub.f32 0.0, %v61_v1  ;;  %v64_v5 = vsub.f32 0.0, %v62_v3  ;;  %v53_v34 = vld [vmem:[#allocation2] sm:$0xff]  ;;  %v54_v38 = vld [vmem:[#allocation2 + $0x8] sm:$0xff]  ;;  %s245_s24 = scalar_lea.vmem %s136_s23, 256  ;;  %p250_p11 = scmp.lt.s32.totalorder %s136_s23, %s136_s23 }
  0x3a   :  { %v105_v41 = vmul.f32 %v53_v34, %v53_v34  ;;  %v106_v43 = vmul.f32 %v54_v38, %v54_v38  ;;  %p246_p10 = scmp.ne.s32.totalorder %s136_s23, %s245_s24  ;;  %p251_p12 = scmp.lt.s32.totalorder %s245_s24, %s245_s24 }
  0x3b   :  { %v65_v6 = vmul.f32 1.442695, %v63_v4  ;;  %v67_v7 = vmul.f32 1.442695, %v64_v5 }
  0x3c   :  { %p252_p13 = por %p251_p12, %p250_p11 }
  0x3d   :  { %167 = vpow2.f32 %v65_v6 }
  0x3e   :  { %169 = vpow2.f32 %v67_v7  ;;  %p253_p0 = pnand %p252_p13, %p246_p10 }
  0x47   :  { %v168_v8 = vpop.eup %167 }
  0x48   :  { %v170_v9 = vpop.eup %169  ;;  %v69_v10 = vadd.f32 1.0, %v168_v8  ;;  %v72_v12 = vmul.f32 -0.5, %v168_v8  ;;  %v75_v15 = vand.u32 2147483647, %v168_v8 }
  0x49   :  { %v78_v11 = vadd.f32 1.0, %v170_v9  ;;  %v81_v13 = vmul.f32 -0.5, %v170_v9  ;;  %v84_v17 = vand.u32 2147483647, %v170_v9 }
  0x4a   :  { %171 = vlog2.f32 %v69_v10  ;;  %v73_v14 = vadd.f32 1.0, %v72_v12  ;;  %vm76_vm0 = vcmp.lt.f32.partialorder %v75_v15, 0.0004427343 }
  0x4b   :  { %173 = vlog2.f32 %v78_v11  ;;  %v82_v16 = vadd.f32 1.0, %v81_v13  ;;  %vm85_vm1 = vcmp.lt.f32.partialorder %v84_v17, 0.0004427343 }
  0x4c   :  { %v74_v18 = vmul.f32 %v168_v8, %v73_v14 }
  0x4d   :  { %v83_v21 = vmul.f32 %v170_v9, %v82_v16 }
  0x54   :  { %v172_v19 = vpop.eup %171 }
  0x55   :  { %v174_v22 = vpop.eup %173  ;;  %v71_v23 = vmul.f32 0.6931472, %v172_v19 }
  0x56   :  { %v80_v25 = vmul.f32 0.6931472, %v174_v22 }
  0x57   :  { %v77_v27 = vsel %vm76_vm0, %v74_v18, %v71_v23 }
  0x58   :  { %v87_v28 = vadd.f32 %v77_v27, %v59_v20  ;;  %v86_v30 = vsel %vm85_vm1, %v83_v21, %v80_v25 }
  0x59   :  { %v88_v31 = vadd.f32 %v86_v30, %v60_v24 }
  0x5a   :  { %v89_v32 = vmul.f32 %v87_v28, %v57_v26  ;;  %v95_v33 = vmax.f32 %v87_v28, 1e-30  ;;  %v103_v40 = vmul.f32 %v87_v28, %v87_v28 }
  0x5b   :  { %v90_v35 = vmul.f32 %v88_v31, %v58_v29  ;;  %v96_v36 = vmax.f32 %v88_v31, 1e-30  ;;  %v104_v42 = vmul.f32 %v88_v31, %v88_v31 }
  0x5c   :  { %v91_v37 = vadd.f32 %v89_v32, %v53_v34  ;;  %175 = vlog2.f32 %v95_v33 }
  0x5d   :  { %v92_v39 = vadd.f32 %v90_v35, %v54_v38  ;;  %177 = vlog2.f32 %v96_v36 }
  0x5e   :  { %93 = vst [vmem:[#allocation8] sm:$0xff] %v91_v37 }
  0x5f   :  { %94 = vst [vmem:[#allocation8 + $0x8] sm:$0xff] %v92_v39 }
  0x60   :  { %256 = shalt.err (!%p253_p0)
}
  0x61   :  { %s257_s27 = scalar_lea.hbm %s390_s3, 256 }
  0x62   :  { %p258_p1 = scmp.ne.s32.totalorder %s390_s3, %s257_s27  ;;  %p261_p2 = scmp.lt.u32.totalorder %s257_s27, %s390_s3 }
  0x64   :  { %p263_p3 = pnand %p261_p2, %p258_p1 }
  0x66   :  { %266 = shalt.err (!%p263_p3)
}
  0x67   :  { %138 = dma.vmem_to_hbm [thread:$0]  %s136_s23, 256, %s390_s3, [#allocation4]   ;;  %v107_v44 = vadd.f32 %v105_v41, %v103_v40  ;;  %v108_v45 = vadd.f32 %v106_v43, %v104_v42  ;;  %v176_v46 = vpop.eup %175 }
  0x68   :  { %v178_v47 = vpop.eup %177  ;;  %v98_v49 = vmul.f32 0.6931472, %v176_v46  ;;  %s301_s8 = smov [#allocation9]  }
  0x69   :  { %v109_v48 = vmul.f32 0.5, %v107_v44  ;;  %v110_v50 = vmul.f32 0.5, %v108_v45  ;;  %v100_v51 = vmul.f32 0.6931472, %v178_v47  ;;  %s145_s9 = sshll.u32 %s301_s8, 4  ;;  %s146_s9 = int_to_ptr.vmem [resolvable:$true] %s145_s9 }
  0x6a   :  { %v101_v52 = vsub.f32 0.0, %v98_v49  ;;  %s267_s3 = scalar_lea.vmem %s146_s9, 256  ;;  %p272_p5 = scmp.lt.s32.totalorder %s146_s9, %s146_s9 }
  0x6b   :  { %v102_v53 = vsub.f32 0.0, %v100_v51  ;;  %p268_p4 = scmp.ne.s32.totalorder %s146_s9, %s267_s3  ;;  %p273_p6 = scmp.lt.s32.totalorder %s267_s3, %s267_s3 }
  0x6c   :  { %v111_v54 = vadd.f32 %v109_v48, %v101_v52 }
  0x6d   :  { %v112_v55 = vadd.f32 %v110_v50, %v102_v53  ;;  %p274_p7 = por %p273_p6, %p272_p5 }
  0x6e   :  { %v159_v56 = vadd.f32 -0.5, %v111_v54 }
  0x6f   :  { %v160_v57 = vadd.f32 -0.5, %v112_v55  ;;  %p275_p8 = pnand %p274_p7, %p268_p4 }
  0x70   :  { %127 = vst [vmem:[#allocation9] sm:$0xff] %v159_v56 }
  0x71   :  { %128 = vst [vmem:[#allocation9 + $0x8] sm:$0xff] %v160_v57 }
  0x72   :  { %278 = shalt.err (!%p275_p8)
}
  0x73   :  { %s279_s11 = scalar_lea.hbm %s391_s4, 256 }
  0x74   :  { %p280_p9 = scmp.ne.s32.totalorder %s391_s4, %s279_s11  ;;  %p283_p10 = scmp.lt.u32.totalorder %s279_s11, %s391_s4 }
  0x76   :  { %p285_p11 = pnand %p283_p10, %p280_p9 }
  0x78   :  { %288 = shalt.err (!%p285_p11)
}
  0x79   :  { %148 = dma.vmem_to_hbm [thread:$0]  %s146_s9, 256, %s391_s4, [#allocation10]  }
  0x7a   :  { %293 = dma.done.wait [#allocation4], 256  }
  0x7b   :  { %294 = vsyncadd [#allocation4], 4294967040 }
  0x7c   :  { %295 = dma.done.wait [#allocation10], 256  }
  0x7d   :  { %296 = vsyncadd [#allocation10], 4294967040 }
  0x7e   :  { %155 = vsyncpa [#allocation3], 1 }
  0x7f   :  { %156 = vsyncpa [#allocation6], 1 }
  0x80   :  { %157 = vsyncpa [#allocation4], 1 }
  0x81   :  { %158 = vsyncpa [#allocation10], 1 }

</bundles_post_ra>
